<compile_context>
chip_gen: v7x
topology: tpu7x:2x2x1
jax: 0.10.0
libtpu: 0.0.40
codegen_flags: <defaults>
</compile_context>

<pallas_src>
import functools

import numpy as np
import jax
import jax.numpy as jnp
from jax.experimental import pallas as pl
from jax.experimental.pallas import tpu as pltpu


# ----------------------- VMEM / tiling helpers -----------------------

def _round_up(x, m):
    return ((x + m - 1) // m) * m


def _vmem_limit_bytes():
    """Per-generation VMEM budget: ~3/4 of physical capacity, capped at 96 MiB.

    v7x: 64 MiB physical -> 48 MiB; v5e/v6e: 128 MiB -> 96 MiB (explicit limit
    overrides the 16/32 MiB scoped defaults so larger tiles are legal).
    """
    try:
        cap = int(pltpu.get_tpu_info().vmem_capacity_bytes)
    except Exception:
        cap = 64 * 1024 * 1024  # conservative (v7x-sized) fallback
    return int(min(cap * 3 // 4, 96 * 1024 * 1024))


def _freq_shift_tiles(bc, hw, vmem_limit_bytes):
    """(bc_tile, hw_tile) for the phase-shift kernel.

    4 f32 plane blocks (2 in, 2 out) x 2 pipeline buffers + (1, hw_tile)
    cos/sin rows must stay inside the VMEM limit -> budget one plane block at
    ~limit/12.  Grid is cdiv-based, so tiles stay bounded for any shape.
    """
    plane_budget = max(vmem_limit_bytes // 12, 128 * 1024)
    max_elems = plane_budget // 4  # f32 elements per plane block

    # Lane axis: full H*W when small, else a multiple of 128 within budget.
    lane_cap = min(16384, max(128, max_elems // 8))
    if hw <= max(256, lane_cap):
        hw_tile = hw                       # full dim is always layout-legal
    else:
        hw_tile = max(128, (lane_cap // 128) * 128)

    # Sublane (B*C) axis: full if it fits, else a multiple of 8.
    rows = max(8, max_elems // max(hw_tile, 1))
    bc_tile = bc if rows >= bc else (rows // 8) * 8

    # v7x megacore: aim for >= 2 "parallel" grid steps when the shape allows.
    if pl.cdiv(bc, bc_tile) * pl.cdiv(hw, hw_tile) < 2:
        if bc_tile >= 16:
            bc_tile = _round_up(bc_tile // 2, 8)
        elif hw_tile >= 256:
            hw_tile = _round_up(hw_tile // 2, 128)
    return bc_tile, hw_tile


def _conv_tiles(batch, cin, cout, hw, vmem_limit_bytes):
    """(b_tile, hw_tile) for the 1x1-conv kernel.

    Targets >= ~2 MiB of in+out payload per grid step (amortizes the ~0.35us
    fixed per-step cost), bounded by the VMEM budget, while keeping >= 2
    parallel grid points for v7x when possible.
    """
    budget = max(vmem_limit_bytes // 6, 256 * 1024)   # one in+out block
    lane_cap_by_budget = budget // max((cin + cout) * 4, 1)
    lane_cap = min(32768, max(128, lane_cap_by_budget))
    if hw <= max(256, lane_cap):
        hw_tile = hw
    else:
        hw_tile = max(128, (lane_cap // 128) * 128)

    per_image = (cin + cout) * hw_tile * 4
    target = 2 * 1024 * 1024
    b_tile = max(1, min(batch, target // per_image, budget // per_image))

    if pl.cdiv(batch, b_tile) * pl.cdiv(hw, hw_tile) < 2 and b_tile > 1:
        b_tile = max(1, b_tile // 2)
    return int(b_tile), int(hw_tile)


# ----------------------- Pallas kernels -----------------------

def freq_shift_kernel(cos_ref, sin_ref, fre_ref, fim_ref, ore_ref, oim_ref):
    """Complex phase shift f * (cos + i*sin) on lane-flattened planes.

    Blocks are (bc_tile, hw_tile) with H*W on the 128-lane axis.  The cos/sin
    tables are precomputed outside (global H/W) and streamed as (1, hw_tile)
    rows that broadcast over the BC sublanes, so the body is pure VPU FMA +
    load/store (cleanly HBM-bound; no EUP or int div/mod per tile).
    """
    re = cos_ref[...]          # (1, hw_tile) -> broadcast over bc_tile rows
    im = sin_ref[...]
    fre = fre_ref[...]
    fim = fim_ref[...]
    ore_ref[...] = fre * re - fim * im
    oim_ref[...] = fre * im + fim * re


def conv1x1_kernel(x_ref, wt_ref, b_ref, o_ref):
    """Pointwise conv, transpose-free: (Cout, Cin) @ (Cin, hw_tile) + bias.

    Lane axis is H*W (lane-dense, unmasked stores); channels are the MXU
    contraction.  The small static loop over b_tile keeps every dot a plain
    2-D matmul (no in-kernel transposes).
    """
    w = wt_ref[...]            # (Cout, Cin)
    bias = b_ref[...]          # (Cout, 1) -> lane broadcast
    for i in range(x_ref.shape[0]):   # static unroll over b_tile
        o_ref[i] = jnp.dot(w, x_ref[i],
                           preferred_element_type=jnp.float32) + bias


# ----------------------- wrappers -----------------------

def freq_shift_2d(f_re, f_im, cos_row, sin_row):
    """torch_freq_shift_2d on flattened (BC, H*W) real/imag planes."""
    bc, hw = f_re.shape
    vmem_limit = _vmem_limit_bytes()
    bc_tile, hw_tile = _freq_shift_tiles(bc, hw, vmem_limit)
    n_bc = pl.cdiv(bc, bc_tile)
    n_hw = pl.cdiv(hw, hw_tile)

    plane_spec = pl.BlockSpec((bc_tile, hw_tile), lambda i, j: (i, j))
    row_spec = pl.BlockSpec((1, hw_tile), lambda i, j: (0, j))
    cost = pl.CostEstimate(
        flops=8 * bc * hw,
        transcendentals=0,                       # cos/sin hoisted outside
        bytes_accessed=4 * (4 * bc * hw + 2 * hw * n_bc),
    )
    return pl.pallas_call(
        freq_shift_kernel,
        out_shape=(jax.ShapeDtypeStruct((bc, hw), jnp.float32),
                   jax.ShapeDtypeStruct((bc, hw), jnp.float32)),
        grid=(n_bc, n_hw),
        in_specs=[row_spec, row_spec, plane_spec, plane_spec],
        out_specs=(plane_spec, plane_spec),
        input_output_aliases={2: 0, 3: 1},       # write planes in place
        compiler_params=pltpu.CompilerParams(
            dimension_semantics=("parallel", "parallel"),
            vmem_limit_bytes=vmem_limit),
        cost_estimate=cost,
    )(cos_row, sin_row, f_re, f_im)


def conv1x1(x_nchw, w, bias):
    """The wrapped 'model': NCHW -> NCHW 1x1 convolution, no XLA transposes."""
    b_, c, h, wd = x_nchw.shape
    cout = w.shape[1]
    hw = h * wd
    x = x_nchw.reshape(b_, c, hw)        # pure reshape, no data movement
    w_t = jnp.transpose(w)               # (Cout, Cin), tiny
    bias2 = bias.reshape(cout, 1)

    vmem_limit = _vmem_limit_bytes()
    b_tile, hw_tile = _conv_tiles(b_, c, cout, hw, vmem_limit)
    grid = (pl.cdiv(b_, b_tile), pl.cdiv(hw, hw_tile))

    cost = pl.CostEstimate(
        flops=2 * b_ * hw * c * cout,
        transcendentals=0,
        bytes_accessed=4 * (b_ * c * hw + b_ * cout * hw + cout * c + cout),
    )
    y = pl.pallas_call(
        conv1x1_kernel,
        out_shape=jax.ShapeDtypeStruct((b_, cout, hw), jnp.float32),
        grid=grid,
        in_specs=[pl.BlockSpec((b_tile, c, hw_tile), lambda i, j: (i, 0, j)),
                  pl.BlockSpec((cout, c), lambda i, j: (0, 0)),
                  pl.BlockSpec((cout, 1), lambda i, j: (0, 0))],
        out_specs=pl.BlockSpec((b_tile, cout, hw_tile), lambda i, j: (i, 0, j)),
        compiler_params=pltpu.CompilerParams(
            dimension_semantics=("parallel", "parallel"),
            vmem_limit_bytes=vmem_limit),
        cost_estimate=cost,
    )(x, w_t, bias2)
    return y.reshape(b_, cout, h, wd)


class FFTShiftWrapper:
    def __init__(self, model):
        self.model = model

    def __call__(self, x, a, b):
        # x: (B, C, H, W, 2) -- legacy torch complex-as-real layout.
        if a is not None and b is not None:
            B, C, H, W, _ = x.shape
            xc = jax.lax.complex(x[..., 0], x[..., 1])
            fc = jnp.fft.fft2(xc, axes=(-2, -1))              # torch.fft(x, 2)
            # TODO(synk): real/imag split + recombine stay in XLA because
            #             lax.bitcast_convert_type rejects complex dtypes, so
            #             the interleaved-layout in-kernel path is unavailable.
            f_re = jnp.real(fc).astype(jnp.float32).reshape(B * C, H * W)
            f_im = jnp.imag(fc).astype(jnp.float32).reshape(B * C, H * W)
            # Phase table built once from the *global* H/W (tiling-invariant).
            m1 = jnp.arange(H, dtype=jnp.float32)[:, None]
            m2 = jnp.arange(W, dtype=jnp.float32)[None, :]
            phase = 2.0 * np.pi * (a / H * m1 + b / W * m2)
            cos_row = jnp.cos(phase).reshape(1, H * W)
            sin_row = jnp.sin(phase).reshape(1, H * W)
            s_re, s_im = freq_shift_2d(f_re, f_im, cos_row, sin_row)
            sc = jax.lax.complex(s_re, s_im).reshape(B, C, H, W)
            x = jnp.real(jnp.fft.ifft2(sc, axes=(-2, -1))).astype(jnp.float32)
        return self.model(x)


# ----------------------- pure-JAX reference -----------------------

def reference(x, a, b, w, bias):
    B, C, H, W, _ = x.shape
    xc = x[..., 0] + 1j * x[..., 1]
    fc = jnp.fft.fft2(xc, axes=(-2, -1))
    m1, m2 = jnp.meshgrid(jnp.arange(H, dtype=jnp.float32),
                          jnp.arange(W, dtype=jnp.float32), indexing="ij")
    phase = 2.0 * np.pi * (a / H * m1 + b / W * m2)
    fc = fc * (jnp.cos(phase) + 1j * jnp.sin(phase))
    xr = jnp.real(jnp.fft.ifft2(fc, axes=(-2, -1))).astype(jnp.float32)
    return jnp.einsum("bchw,co->bohw", xr, w) + bias[None, :, None, None]


# ----------------------- main -----------------------

@jax.jit
def forward(x, a, b, w, bias):
    wrapper = FFTShiftWrapper(lambda t: conv1x1(t, w, bias))
    return wrapper(x, a, b)


if __name__ == "__main__":
    key = jax.random.PRNGKey(0)
    kx, kw, kb = jax.random.split(key, 3)

    B, C, H, W = 2, 4, 16, 16
    Cout = 8
    x = jax.random.normal(kx, (B, C, H, W, 2), dtype=jnp.float32)
    a, b = 3.0, 5.0

    # Deterministic "model" parameters (1x1 conv: Cin -> Cout).
    w = jax.random.normal(kw, (C, Cout), dtype=jnp.float32) * 0.1
    bias = jax.random.normal(kb, (Cout,), dtype=jnp.float32) * 0.1

    out = forward(x, a, b, w, bias)
    out = jax.block_until_ready(out)
    assert out.shape == (B, Cout, H, W), out.shape

    ref = jax.block_until_ready(reference(x, a, b, w, bias))
    np.testing.assert_allclose(np.asarray(out), np.asarray(ref),
                               rtol=1e-4, atol=1e-4)

    print("KERNEL_OK")
</pallas_src>

<mosaic_0001>
module attributes {stable_mosaic.version = 11 : i64} {
  func.func @freq_shift_kernel(%arg0: i32, %arg1: i32, %arg2: memref<1x128xf32, #tpu.memory_space<vmem>>, %arg3: memref<1x128xf32, #tpu.memory_space<vmem>>, %arg4: memref<8x128xf32, #tpu.memory_space<vmem>>, %arg5: memref<8x128xf32, #tpu.memory_space<vmem>>, %arg6: memref<8x128xf32, #tpu.memory_space<vmem>>, %arg7: memref<8x128xf32, #tpu.memory_space<vmem>>) attributes {dimension_semantics = [#tpu.dimension_semantics<parallel>, #tpu.dimension_semantics<parallel>], iteration_bounds = array<i64: 1, 2>, scalar_prefetch = 0 : i64, scratch_operands = 0 : i64, tpu.core_type = #tpu.core_type<tc>, window_params = [{transform_indices = @transform_0, window_bounds = array<i64: 1, 128>}, {transform_indices = @transform_1, window_bounds = array<i64: 1, 128>}, {transform_indices = @transform_2, window_bounds = array<i64: 8, 128>}, {transform_indices = @transform_3, window_bounds = array<i64: 8, 128>}, {transform_indices = @transform_4, window_bounds = array<i64: 8, 128>}, {transform_indices = @transform_5, window_bounds = array<i64: 8, 128>}]} {
    %c0 = arith.constant 0 : index
    %c0_0 = arith.constant 0 : index
    %0 = vector.load %arg2[%c0, %c0_0] : memref<1x128xf32, #tpu.memory_space<vmem>>, vector<1x128xf32>
    %c0_1 = arith.constant 0 : index
    %c0_2 = arith.constant 0 : index
    %1 = vector.load %arg3[%c0_1, %c0_2] : memref<1x128xf32, #tpu.memory_space<vmem>>, vector<1x128xf32>
    %c0_3 = arith.constant 0 : index
    %c0_4 = arith.constant 0 : index
    %2 = vector.load %arg4[%c0_3, %c0_4] : memref<8x128xf32, #tpu.memory_space<vmem>>, vector<8x128xf32>
    %c0_5 = arith.constant 0 : index
    %c0_6 = arith.constant 0 : index
    %3 = vector.load %arg5[%c0_5, %c0_6] : memref<8x128xf32, #tpu.memory_space<vmem>>, vector<8x128xf32>
    %4 = vector.broadcast %0 : vector<1x128xf32> to vector<8x128xf32>
    %5 = arith.mulf %2, %4 : vector<8x128xf32>
    %6 = vector.broadcast %1 : vector<1x128xf32> to vector<8x128xf32>
    %7 = arith.mulf %3, %6 : vector<8x128xf32>
    %8 = arith.subf %5, %7 : vector<8x128xf32>
    %c0_7 = arith.constant 0 : index
    %c0_8 = arith.constant 0 : index
    %9 = vector.load %arg6[%c0_7, %c0_8] : memref<8x128xf32, #tpu.memory_space<vmem>>, vector<8x128xf32>
    tpu.vector_store %arg6[%c0_7, %c0_8], %8 {strides = array<i32>} : memref<8x128xf32, #tpu.memory_space<vmem>>, vector<8x128xf32>,
    %10 = vector.broadcast %1 : vector<1x128xf32> to vector<8x128xf32>
    %11 = arith.mulf %2, %10 : vector<8x128xf32>
    %12 = vector.broadcast %0 : vector<1x128xf32> to vector<8x128xf32>
    %13 = arith.mulf %3, %12 : vector<8x128xf32>
    %14 = arith.addf %11, %13 : vector<8x128xf32>
    %c0_9 = arith.constant 0 : index
    %c0_10 = arith.constant 0 : index
    %15 = vector.load %arg7[%c0_9, %c0_10] : memref<8x128xf32, #tpu.memory_space<vmem>>, vector<8x128xf32>
    tpu.vector_store %arg7[%c0_9, %c0_10], %14 {strides = array<i32>} : memref<8x128xf32, #tpu.memory_space<vmem>>, vector<8x128xf32>,
    return
  }
  func.func @transform_0(%arg0: i32, %arg1: i32) -> (i32, i32) {
    %c0_i32 = arith.constant 0 : i32
    %c0_i32_0 = arith.constant 0 : i32
    return %c0_i32, %arg1 : i32, i32
  }
  func.func @transform_1(%arg0: i32, %arg1: i32) -> (i32, i32) {
    %c0_i32 = arith.constant 0 : i32
    %c0_i32_0 = arith.constant 0 : i32
    return %c0_i32, %arg1 : i32, i32
  }
  func.func @transform_2(%arg0: i32, %arg1: i32) -> (i32, i32) {
    %c0_i32 = arith.constant 0 : i32
    return %arg0, %arg1 : i32, i32
  }
  func.func @transform_3(%arg0: i32, %arg1: i32) -> (i32, i32) {
    %c0_i32 = arith.constant 0 : i32
    return %arg0, %arg1 : i32, i32
  }
  func.func @transform_4(%arg0: i32, %arg1: i32) -> (i32, i32) {
    %c0_i32 = arith.constant 0 : i32
    return %arg0, %arg1 : i32, i32
  }
  func.func @transform_5(%arg0: i32, %arg1: i32) -> (i32, i32) {
    %c0_i32 = arith.constant 0 : i32
    return %arg0, %arg1 : i32, i32
  }
}

module attributes {stable_mosaic.version = 11 : i64} {
  func.func @conv1x1_kernel(%arg0: i32, %arg1: i32, %arg2: memref<1x4x256xf32, #tpu.memory_space<vmem>>, %arg3: memref<8x4xf32, #tpu.memory_space<vmem>>, %arg4: memref<8x1xf32, #tpu.memory_space<vmem>>, %arg5: memref<1x8x256xf32, #tpu.memory_space<vmem>>) attributes {dimension_semantics = [#tpu.dimension_semantics<parallel>, #tpu.dimension_semantics<parallel>], iteration_bounds = array<i64: 2, 1>, scalar_prefetch = 0 : i64, scratch_operands = 0 : i64, tpu.core_type = #tpu.core_type<tc>, window_params = [{transform_indices = @transform_0, window_bounds = array<i64: 1, 4, 256>}, {pipeline_mode = #tpu.pipeline_mode<synchronous>, transform_indices = @transform_1, window_bounds = array<i64: 8, 4>}, {pipeline_mode = #tpu.pipeline_mode<synchronous>, transform_indices = @transform_2, window_bounds = array<i64: 8, 1>}, {transform_indices = @transform_3, window_bounds = array<i64: 1, 8, 256>}]} {
    %c0 = arith.constant 0 : index
    %c0_0 = arith.constant 0 : index
    %0 = vector.load %arg3[%c0, %c0_0] : memref<8x4xf32, #tpu.memory_space<vmem>>, vector<8x4xf32>
    %c0_1 = arith.constant 0 : index
    %c0_2 = arith.constant 0 : index
    %1 = vector.load %arg4[%c0_1, %c0_2] : memref<8x1xf32, #tpu.memory_space<vmem>>, vector<8x1xf32>
    %c0_3 = arith.constant 0 : index
    %c0_4 = arith.constant 0 : index
    %c0_5 = arith.constant 0 : index
    %2 = vector.load %arg2[%c0_3, %c0_4, %c0_5] : memref<1x4x256xf32, #tpu.memory_space<vmem>>, vector<1x4x256xf32>
    %3 = vector.shape_cast %2 : vector<1x4x256xf32> to vector<4x256xf32>
    %cst = arith.constant dense<0.000000e+00> : vector<8x256xf32>
    %4 = tpu.matmul %0, %3, %cst {dimension_numbers = #tpu.dot_dimension_numbers<[1], [0], [0], [1], [0, 0, 1, 1], [], []>} : vector<8x4xf32>, vector<4x256xf32>, vector<8x256xf32> -> vector<8x256xf32>
    %5 = vector.broadcast %1 : vector<8x1xf32> to vector<8x256xf32>
    %6 = arith.addf %4, %5 : vector<8x256xf32>
    %c0_6 = arith.constant 0 : index
    %c0_7 = arith.constant 0 : index
    %c0_8 = arith.constant 0 : index
    %7 = vector.load %arg5[%c0_6, %c0_7, %c0_8] : memref<1x8x256xf32, #tpu.memory_space<vmem>>, vector<1x8x256xf32>
    %8 = vector.shape_cast %7 : vector<1x8x256xf32> to vector<8x256xf32>
    %9 = vector.shape_cast %6 : vector<8x256xf32> to vector<1x8x256xf32>
    tpu.vector_store %arg5[%c0_6, %c0_7, %c0_8], %9 {strides = array<i32>} : memref<1x8x256xf32, #tpu.memory_space<vmem>>, vector<1x8x256xf32>,
    return
  }
  func.func @transform_0(%arg0: i32, %arg1: i32) -> (i32, i32, i32) {
    %c0_i32 = arith.constant 0 : i32
    %c0_i32_0 = arith.constant 0 : i32
    return %arg0, %c0_i32, %arg1 : i32, i32, i32
  }
  func.func @transform_1(%arg0: i32, %arg1: i32) -> (i32, i32) {
    %c0_i32 = arith.constant 0 : i32
    %c0_i32_0 = arith.constant 0 : i32
    %c0_i32_1 = arith.constant 0 : i32
    return %c0_i32, %c0_i32_0 : i32, i32
  }
  func.func @transform_2(%arg0: i32, %arg1: i32) -> (i32, i32) {
    %c0_i32 = arith.constant 0 : i32
    %c0_i32_0 = arith.constant 0 : i32
    %c0_i32_1 = arith.constant 0 : i32
    return %c0_i32, %c0_i32_0 : i32, i32
  }
  func.func @transform_3(%arg0: i32, %arg1: i32) -> (i32, i32, i32) {
    %c0_i32 = arith.constant 0 : i32
    %c0_i32_0 = arith.constant 0 : i32
    return %arg0, %c0_i32, %arg1 : i32, i32, i32
  }
}

</mosaic_0001>

<bundles_post_ra>
// kernel: forward.2
= control target key start
LH: loop header
LB: loop body
LE: loop exit
PB: predicated region body
PF: predicated region fallthrough
CT: control target
= control target key end

     0   :  { %s617_s18 = smov 0   ;;  %s619_s19 = smov 0   ;;  %s659_s0 = inlined_call_operand.vmem [shape: f32[1,256], index: 0, kind: input, shape index: {}]   ;;  %s660_s1 = inlined_call_operand.vmem [shape: f32[1,256], index: 1, kind: input, shape index: {}]   ;;  %s661_s2 = inlined_call_operand.vmem [shape: f32[8,256], index: 2, kind: input, shape index: {}, may-alias: {2,4}]   ;;  %s662_s3 = inlined_call_operand.vmem [shape: f32[8,256], index: 3, kind: input, shape index: {}, may-alias: {3,5}]   ;;  %s663_s4 = inlined_call_operand.vmem [shape: f32[8,256], index: 4, kind: output, shape index: {0}, may-alias: {2,4}]   ;;  %s664_s5 = inlined_call_operand.vmem [shape: f32[8,256], index: 5, kind: output, shape index: {1}, may-alias: {3,5}]  }
   0x1   :  { %s621_s20 = smov 0  }
   0x2 LB: > { %s25_s21 = sadd.s32 1, %s581_s19  ;;  %p530_p0 = scmp.ge.s32.totalorder %s585_s20, 1  ;;  %s585_s20 = sphi %s621_s20, %s16_s20   ;;  %s581_s19 = sphi %s619_s19, %s666_s19   ;;  %s577_s18 = sphi %s617_s18, %s665_s18  }
   0x3   : > { %p26_p1 = scmp.ge.s32.totalorder %s25_s21, 2  ;;  %p242_p2 = scmp.lt.s32.totalorder %s585_s20, 3 }
   0x5   : > { %s668_s21 = smov (%p26_p1, %s25_s21), 0  ;;  %p243_p3 = pnand %p530_p0, %p242_p2 }
   0x6   : > { %p298_p4 = scmp.lt.s32.totalorder (!%p243_p3), %s577_s18, 1 }
   0x7   : > { %246 = sbr.rel (%p243_p3) target bundleno = 25 (0x19), region = 36 }
   0xe   : > { %s670_s18 = smov (!%p298_p4, %s577_s18), 1 }
   0xf   : > { %s300_s24 = scalar_lea.vmem %s659_s0, %s670_s18  ;;  %s303_s27 = scalar_lea.vmem %s660_s1, %s670_s18 }
  0x10   : > { %s531_s28 = sshll.u32 %s670_s18, 3  ;;  %v535_v0 = vld [vmem:[%s300_s24] ss:$0 sm:$0xff] }
  0x11   : > { %v536_v1 = vld [vmem:[%s303_s27] ss:$0 sm:$0xff]  ;;  %s311_s6 = scalar_lea.vmem %s661_s2, %s531_s28  ;;  %s319_s9 = scalar_lea.vmem %s662_s3, %s531_s28 }
  0x12   : > { %v338_v2 = vld [vmem:[%s311_s6] sm:$0xff]  ;;  %s327_s12 = scalar_lea.vmem %s663_s4, %s531_s28  ;;  %s335_s15 = scalar_lea.vmem %s664_s5, %s531_s28 }
  0x13   : > { %v339_v3 = vld [vmem:[%s319_s9] sm:$0xff]  ;;  %v346_v4 = vmul.f32 %v535_v0, %v338_v2  ;;  %v356_v6 = vmul.f32 %v536_v1, %v338_v2 }
  0x14   : > { %v353_v5 = vmul.f32 %v536_v1, %v339_v3  ;;  %v357_v7 = vmul.f32 %v535_v0, %v339_v3 }
  0x16   : > { %v354_v8 = vsub.f32 %v346_v4, %v353_v5  ;;  %v358_v9 = vadd.f32 %v357_v7, %v356_v6 }
  0x18   : > { %355 = vst [vmem:[%s327_s12] sm:$0xff] %v354_v8  ;;  %359 = vst [vmem:[%s335_s15] sm:$0xff] %v358_v9 }
  0x19 PF: > { %s16_s20 = sadd.s32 1, %s585_s20   ;;  %s665_s18 = smov %s581_s19 }
  0x1a   : > { %p13_p5 = scmp.ge.s32.totalorder %s16_s20, 4   ;;  %s666_s19 = smov %s668_s21 }
  0x1c   :  { %15 = sbr.rel (!%p13_p5) target bundleno = 2 (0x2), region = 87 }

// kernel: forward.3
= control target key start
LH: loop header
LB: loop body
LE: loop exit
PB: predicated region body
PF: predicated region fallthrough
CT: control target
= control target key end

     0   :  { %s479_s12 = smov 0   ;;  %s481_s13 = smov 0   ;;  %s518_s0 = inlined_call_operand.vmem [shape: f32[2,4,256], index: 0, kind: input, shape index: {}]   ;;  %s519_s1 = inlined_call_operand.vmem [shape: f32[8,4], index: 1, kind: input, shape index: {}]   ;;  %s520_s2 = inlined_call_operand.vmem [shape: f32[8,1], index: 2, kind: input, shape index: {}]   ;;  %s521_s3 = inlined_call_operand.vmem [shape: f32[2,8,256], index: 3, kind: output, shape index: {}]  }
   0x1   :  { %s483_s14 = smov 0  }
   0x2 LB: > { %s25_s15 = sadd.s32 1, %s451_s13  ;;  %p393_p0 = scmp.ge.s32.totalorder %s455_s14, 1  ;;  %s455_s14 = sphi %s483_s14, %s13_s14   ;;  %s451_s13 = sphi %s481_s13, %s523_s13   ;;  %s447_s12 = sphi %s479_s12, %s522_s12  }
   0x3   : > { %p27_p1 = scmp.ge.s32.totalorder %s25_s15, 2  ;;  %p158_p2 = scmp.lt.s32.totalorder %s455_s14, 3 }
   0x5   : > { %s525_s15 = smov (%p27_p1, %s25_s15), 0  ;;  %p159_p3 = pnand %p393_p0, %p158_p2 }
   0x6   : > { %p191_p4 = scmp.lt.s32.totalorder (!%p159_p3), %s447_s12, 1  ;;  %v457_v0 = vmov (!%p159_p3), 0.0   ;;  %v458_v1 = vmov (!%p159_p3), 0   ;;  %v211_v2 = vld [vmem:[%s520_s2] sm:$0xff] (!%p159_p3)  ;;  %vm224_vm0 = vcmask (!%p159_p3), 1043456   ;;  %vm220_vm1 = vcmask (!%p159_p3), 31744  }
   0x7   : > { %162 = sbr.rel (%p159_p3) target bundleno = 238 (0xee), region = 32  ;;  %293 = vmatprep.mubr.f32.mxu0 (!%p159_p3), %v457_v0  ;;  %431 = vset.pattern.permute.xlu0 (!%p159_p3), %v458_v1  ;;  %v210_v5 = vld [vmem:[%s519_s1] sm:$0xff] (!%p159_p3) }
   0x8   : > { %215 = vperm.xlu0 (!%p159_p3), %431, %v211_v2  }
   0xe   : > { %s527_s12 = smov (!%p191_p4, %s447_s12), 1 }
   0xf   : > { %s403_s18 = sshll.u32 %s527_s12, 3  ;;  %s404_s24 = sshll.u32 %s527_s12, 4 }
  0x10   : > { %s198_s21 = scalar_lea.vmem %s518_s0, %s403_s18  ;;  %s208_s27 = scalar_lea.vmem %s521_s3, %s404_s24 }
  0x11   : > { %v212_v3 = vld [vmem:[%s198_s21] sm:$0xff] }
  0x12   : > { %v219_v4 = vcombine.high %v212_v3, %v212_v3 }
  0x14   : > { %398 = vmatprep.subr.msk.mxu0 %vm224_vm0, %v219_v4 }
  0x15   : > { %399 = vmatpush1.msk.msra.mxu0 %vm224_vm0, %v212_v3 }
  0x16   : > { %400 = vmatmul.mubr.msk.f32.vlgmr.msra.gmra.mrb[0].mxu0 %vm220_vm1, %v210_v5 }
  0x87   : > { %v216_v6 = vpop.permute.xlu0 %215 }
  0xe9   : > { %v295_v7 = vpop.f32.mrb[0].mxu0 }
  0xea   : > { %v296_v8 = vadd.f32 %v295_v7, %v216_v6  ;;  %v297_v9 = vpop.f32.mrb[1].mxu0 }
  0xeb   : > { %v298_v10 = vadd.f32 %v297_v9, %v216_v6 }
  0xec   : > { %300 = vst [vmem:[%s208_s27] sm:$0xff] %v296_v8 }
  0xed   : > { %301 = vst [vmem:[%s208_s27 + $0x8] sm:$0xff] %v298_v10 }
  0xee PF: > { %s13_s14 = sadd.s32 1, %s455_s14   ;;  %s522_s12 = smov %s451_s13 }
  0xef   : > { %p10_p5 = scmp.ge.s32.totalorder %s13_s14, 4   ;;  %s523_s13 = smov %s525_s15 }
  0xf1   :  { %12 = sbr.rel (!%p10_p5) target bundleno = 2 (0x2), region = 62 }

</bundles_post_ra>
